<compile_context>
chip_gen: v6e
topology: v6e:2x2x1
jax: 0.10.0
libtpu: 0.0.40
codegen_flags: <defaults>
</compile_context>

<pallas_src>
import functools

import numpy as np
import jax
import jax.numpy as jnp
from jax import lax
from jax.experimental import pallas as pl
from jax.experimental.pallas import tpu as pltpu


# ----------------------------------------------------------------------------
# Generation-dependent VMEM budget and tile preferences.
# ----------------------------------------------------------------------------
def _tpu_vmem_capacity_bytes():
    try:
        info = pltpu.get_tpu_info()
        for name in ("vmem_capacity_bytes", "vmem_bytes", "vmem_size_bytes"):
            cap = getattr(info, name, None)
            if cap:
                return int(cap)
    except Exception:
        pass
    # Conservative fallback (v7x-sized) if the query is unavailable.
    return 64 * 1024 * 1024


_VMEM_CAP = _tpu_vmem_capacity_bytes()
# Leave headroom below physical VMEM for double-buffers & compiler scratch:
# ~48 MiB on v7x (64 MiB physical), ~96 MiB on v5e/v6e (128 MiB physical).
_VMEM_LIMIT = int(_VMEM_CAP * 3 // 4)
_BIG_VMEM = _VMEM_CAP >= 100 * 1024 * 1024

_TM_PREF = 512 if _BIG_VMEM else 256   # projection row-tile
_TN_PREF = 512 if _BIG_VMEM else 256   # projection out-feature tile
_TKC_PREF = 512                        # projection contraction tile
_TQ_PREF = 256                         # attention q tile
_TKV_PREF = 256                        # attention kv tile
# TODO(synk): sweep (tq, tk) over {128,256}x{256,512} per generation and check
#             the bundle dump for vreg spill before committing defaults.


def _pick_tile(n, pref, align):
    """Largest t <= pref with t % align == 0 and n % t == 0; else full n."""
    if n <= pref:
        return n
    t = (min(pref, n) // align) * align
    while t >= align:
        if n % t == 0:
            return t
        t -= align
    return n


# ----------------------------------------------------------------------------
# Tiled linear: y = x @ W + b.  bf16 MXU operands, f32 VMEM accumulator.
# Grid: (row tiles, out-feature tiles, contraction tiles).
# ----------------------------------------------------------------------------
def _linear_kernel(x_ref, w_ref, b_ref, o_ref, acc_ref):
    kk = pl.program_id(2)

    @pl.when(kk == 0)
    def _init():
        acc_ref[...] = jnp.zeros_like(acc_ref)

    x = x_ref[...].astype(jnp.bfloat16)              # feed MXU bf16
    acc_ref[...] += jnp.dot(x, w_ref[...], preferred_element_type=jnp.float32)

    @pl.when(kk == pl.num_programs(2) - 1)
    def _finalize():
        o_ref[...] = (acc_ref[...] + b_ref[...]).astype(o_ref.dtype)


def _linear(x2d, w_bf16, b, out_dtype):
    M, Din = x2d.shape
    Dout = w_bf16.shape[1]
    tm = _pick_tile(M, _TM_PREF, 8)
    tn = _pick_tile(Dout, _TN_PREF, 128)
    tk = _pick_tile(Din, _TKC_PREF, 128)
    return pl.pallas_call(
        _linear_kernel,
        out_shape=jax.ShapeDtypeStruct((M, Dout), out_dtype),
        grid=(M // tm, Dout // tn, Din // tk),
        in_specs=[
            pl.BlockSpec((tm, tk), lambda i, j, k: (i, k)),
            pl.BlockSpec((tk, tn), lambda i, j, k: (k, j)),
            pl.BlockSpec((1, tn), lambda i, j, k: (0, j)),
        ],
        out_specs=pl.BlockSpec((tm, tn), lambda i, j, k: (i, j)),
        scratch_shapes=[pltpu.VMEM((tm, tn), jnp.float32)],
        compiler_params=pltpu.CompilerParams(
            dimension_semantics=("parallel", "parallel", "arbitrary"),
            vmem_limit_bytes=_VMEM_LIMIT),
    )(x2d, w_bf16, b.reshape(1, Dout))


# ----------------------------------------------------------------------------
# Flash attention over pre-projected Q/K/V (bf16), heads via column slicing.
# m/l are lane-replicated per head; acc gets one dense (tq, D) RMW per kv step.
# ----------------------------------------------------------------------------
def _flash_attn_kernel(q_ref, k_ref, v_ref, o_ref, m_ref, l_ref, acc_ref,
                       *, n_heads, d_k):
    ki = pl.program_id(2)
    nk = pl.num_programs(2)

    @pl.when(ki == 0)
    def _init():
        m_ref[...] = jnp.full(m_ref.shape, -jnp.inf, jnp.float32)
        l_ref[...] = jnp.zeros(l_ref.shape, jnp.float32)
        acc_ref[...] = jnp.zeros(acc_ref.shape, jnp.float32)

    # Fold 1/sqrt(d_k) into q once (bf16 VPU mul over (tq, D)) rather than
    # scaling every (tq, tk) f32 score tile per head per kv step.
    scale = 1.0 / float(np.sqrt(d_k))
    q = q_ref[0] * scale          # (tq, D) bf16
    k = k_ref[0]                  # (tk, D) bf16
    v = v_ref[0]                  # (tk, D) bf16
    qk_dims = (((1,), (1,)), ((), ()))   # contract d_k, no transpose materialized

    acc_prev = acc_ref[...]       # single dense (tq, D) f32 load per kv step
    new_chunks = []
    for h in range(n_heads):      # static loop; column slices, no head transpose
        lo, hi = h * d_k, (h + 1) * d_k

        s = lax.dot_general(q[:, lo:hi], k[:, lo:hi], qk_dims,
                            preferred_element_type=jnp.float32)       # (tq, tk)

        m_prev = m_ref[h]                                   # (tq, 128) dense load
        m_prev_c = m_prev[:, 0:1]                           # (tq, 1) value slice
        row_max = jnp.max(s, axis=-1, keepdims=True)        # (tq, 1)
        m_new_c = jnp.maximum(m_prev_c, row_max)
        alpha_c = jnp.exp(m_prev_c - m_new_c)               # (tq, 1)
        p = jnp.exp(s - m_new_c)                            # (tq, tk)

        # Lane-dense 128-wide stores of the replicated running statistics.
        l_ref[h] = alpha_c * l_ref[h] + jnp.sum(p, axis=-1, keepdims=True)
        m_ref[h] = jnp.maximum(m_prev, row_max)

        pv = jnp.dot(p.astype(v.dtype), v[:, lo:hi],
                     preferred_element_type=jnp.float32)    # (tq, d_k) f32
        new_chunks.append(alpha_c * acc_prev[:, lo:hi] + pv)

    # Single lane-dense (tq, D) accumulator store per kv step (replaces H
    # masked sub-128-lane read-modify-writes).
    acc_ref[...] = jnp.concatenate(new_chunks, axis=-1)

    @pl.when(ki == nk - 1)
    def _finalize():
        # Normalize acc in place per head, then one lane-dense (tq, D) output
        # store (no concatenate / extra temporary).
        for h in range(n_heads):
            lo, hi = h * d_k, (h + 1) * d_k
            inv = pl.reciprocal(l_ref[h][:, 0:1], approx=True)   # (tq, 1) on EUP
            acc_ref[:, lo:hi] = acc_ref[:, lo:hi] * inv
        o_ref[0] = acc_ref[...].astype(o_ref.dtype)


def _attention(qp, kp, vp, *, n_heads, d_k):
    B, S, D = qp.shape
    tq = _pick_tile(S, _TQ_PREF, 8)
    tk = _pick_tile(S, _TKV_PREF, 8)
    kernel = functools.partial(_flash_attn_kernel, n_heads=n_heads, d_k=d_k)
    return pl.pallas_call(
        kernel,
        out_shape=jax.ShapeDtypeStruct((B, S, D), jnp.bfloat16),
        grid=(B, S // tq, S // tk),
        in_specs=[
            pl.BlockSpec((1, tq, D), lambda b, qi, ki: (b, qi, 0)),
            pl.BlockSpec((1, tk, D), lambda b, qi, ki: (b, ki, 0)),
            pl.BlockSpec((1, tk, D), lambda b, qi, ki: (b, ki, 0)),
        ],
        out_specs=pl.BlockSpec((1, tq, D), lambda b, qi, ki: (b, qi, 0)),
        scratch_shapes=[
            pltpu.VMEM((n_heads, tq, 128), jnp.float32),   # running max m (lane-replicated)
            pltpu.VMEM((n_heads, tq, 128), jnp.float32),   # running denom l (lane-replicated)
            pltpu.VMEM((tq, D), jnp.float32),              # merged-head accumulator
        ],
        compiler_params=pltpu.CompilerParams(
            dimension_semantics=("parallel", "parallel", "arbitrary"),
            vmem_limit_bytes=_VMEM_LIMIT),
    )(qp, kp, vp)


# ----------------------------------------------------------------------------
# Full module forward.
# ----------------------------------------------------------------------------
def multi_head_attention(Q, K, V, w_in, b_in, w_out, b_out, *, n_heads, d_k,
                         is_self_attention=None):
    """Q, K, V: (B, S, d_model). w_*: (d_model, d_model) pre-transposed, b_*: (d_model,)."""
    B, S, D = Q.shape
    assert n_heads * d_k == D

    # Explicit flag: the `is` identity check does not survive jit tracing.
    if is_self_attention is None:
        is_self_attention = (Q is K) and (K is V)

    # bf16 weights: halves weight DMA bytes and feeds the MXU natively.
    w_in_bf = w_in.astype(jnp.bfloat16)
    w_out_bf = w_out.astype(jnp.bfloat16)

    if is_self_attention:
        # Self-attention fast path: shared Linear -> project once, reuse 3x.
        xp = _linear(Q.reshape(B * S, D), w_in_bf, b_in, jnp.bfloat16)
        qp = kp = vp = xp.reshape(B, S, D)
    else:
        # Three projection calls; avoids the extra HBM round trip of stacking
        # Q/K/V through a concatenate (weight tiles are re-streamed per call).
        qp = _linear(Q.reshape(B * S, D), w_in_bf, b_in, jnp.bfloat16).reshape(B, S, D)
        kp = _linear(K.reshape(B * S, D), w_in_bf, b_in, jnp.bfloat16).reshape(B, S, D)
        vp = _linear(V.reshape(B * S, D), w_in_bf, b_in, jnp.bfloat16).reshape(B, S, D)

    ctx = _attention(qp, kp, vp, n_heads=n_heads, d_k=d_k)   # (B, S, D) bf16

    out = _linear(ctx.reshape(B * S, D), w_out_bf, b_out, Q.dtype)
    return out.reshape(B, S, D)


# ----------------------------------------------------------------------------
# Pure-JAX f32 reference mirroring the PyTorch forward (eval, mask=None).
# ----------------------------------------------------------------------------
def _reference(Q, K, V, w_in, b_in, w_out, b_out, n_heads, d_k):
    B, S, D = Q.shape
    hp = jax.lax.Precision.HIGHEST
    proj = lambda x: jnp.einsum('bsd,de->bse', x, w_in, precision=hp) + b_in
    Qp, Kp, Vp = proj(Q), proj(K), proj(V)
    split = lambda t: jnp.transpose(t.reshape(B, S, n_heads, d_k), (0, 2, 1, 3))
    Qh, Kh, Vh = split(Qp), split(Kp), split(Vp)
    scores = jnp.einsum('bhqd,bhkd->bhqk', Qh, Kh, precision=hp) / np.sqrt(d_k)
    probs = jax.nn.softmax(scores, axis=-1)
    ctx = jnp.einsum('bhqk,bhkd->bhqd', probs, Vh, precision=hp)
    merged = jnp.transpose(ctx, (0, 2, 1, 3)).reshape(B, S, D)
    return jnp.einsum('bsd,de->bse', merged, w_out, precision=hp) + b_out


if __name__ == "__main__":
    n_heads, d_model, d_k = 4, 32, 8
    B, S = 2, 8

    key = jax.random.PRNGKey(0)
    k1, k2, k3, k4, k5, k6, k7 = jax.random.split(key, 7)
    Q = jax.random.normal(k1, (B, S, d_model), jnp.float32)
    K = jax.random.normal(k2, (B, S, d_model), jnp.float32)
    V = jax.random.normal(k3, (B, S, d_model), jnp.float32)

    # Parameters (shapes match nn.Linear(d_model, d_model) x2, pre-transposed).
    w_in = 0.1 * jax.random.normal(k4, (d_model, d_model), jnp.float32)
    b_in = 0.1 * jax.random.normal(k5, (d_model,), jnp.float32)
    w_out = 0.1 * jax.random.normal(k6, (d_model, d_model), jnp.float32)
    b_out = 0.1 * jax.random.normal(k7, (d_model,), jnp.float32)

    # Cross-attention path (distinct Q, K, V).
    out = multi_head_attention(Q, K, V, w_in, b_in, w_out, b_out,
                               n_heads=n_heads, d_k=d_k)
    out = jax.block_until_ready(out)
    expected = jax.block_until_ready(
        _reference(Q, K, V, w_in, b_in, w_out, b_out, n_heads, d_k))
    assert out.shape == (B, S, d_model)
    # bf16 MXU operands + approx reciprocal -> looser tolerance than pure f32.
    np.testing.assert_allclose(np.asarray(out), np.asarray(expected),
                               rtol=2e-2, atol=2e-2)

    # Self-attention fast path (explicit flag; project once, reuse).
    out_sa = jax.block_until_ready(
        multi_head_attention(Q, Q, Q, w_in, b_in, w_out, b_out,
                             n_heads=n_heads, d_k=d_k, is_self_attention=True))
    expected_sa = jax.block_until_ready(
        _reference(Q, Q, Q, w_in, b_in, w_out, b_out, n_heads, d_k))
    np.testing.assert_allclose(np.asarray(out_sa), np.asarray(expected_sa),
                               rtol=2e-2, atol=2e-2)

    print("KERNEL_OK")
</pallas_src>

<mosaic_0001>
module attributes {stable_mosaic.version = 11 : i64} {
  func.func @_linear_kernel(%arg0: i32, %arg1: i32, %arg2: i32, %arg3: memref<16x32xf32, #tpu.memory_space<vmem>>, %arg4: memref<32x32xbf16, #tpu.memory_space<vmem>>, %arg5: memref<1x32xf32, #tpu.memory_space<vmem>>, %arg6: memref<16x32xbf16, #tpu.memory_space<vmem>>, %arg7: memref<16x32xf32, #tpu.memory_space<vmem>>) attributes {dimension_semantics = [#tpu.dimension_semantics<parallel>, #tpu.dimension_semantics<parallel>, #tpu.dimension_semantics<arbitrary>], iteration_bounds = array<i64: 1, 1, 1>, scalar_prefetch = 0 : i64, scratch_operands = 1 : i64, tpu.core_type = #tpu.core_type<tc>, window_params = [{transform_indices = @transform_0, window_bounds = array<i64: 16, 32>}, {transform_indices = @transform_1, window_bounds = array<i64: 32, 32>}, {transform_indices = @transform_2, window_bounds = array<i64: 1, 32>}, {transform_indices = @transform_3, window_bounds = array<i64: 16, 32>}]} {
    %c0_i32 = arith.constant 0 : i32
    %0 = arith.cmpi eq, %arg2, %c0_i32 : i32
    %1 = arith.extui %0 : i1 to i32
    %c0_i32_0 = arith.constant 0 : i32
    %2 = arith.cmpi ne, %1, %c0_i32_0 : i32
    scf.if %2 {
      %cst_10 = arith.constant 0.000000e+00 : f32
      %13 = vector.broadcast %cst_10 : f32 to vector<16x32xf32>
      %c0_11 = arith.constant 0 : index
      %c0_12 = arith.constant 0 : index
      %14 = vector.load %arg7[%c0_11, %c0_12] : memref<16x32xf32, #tpu.memory_space<vmem>>, vector<16x32xf32>
      tpu.vector_store %arg7[%c0_11, %c0_12], %13 {strides = array<i32>} : memref<16x32xf32, #tpu.memory_space<vmem>>, vector<16x32xf32>,
    } else {
    }
    %c0 = arith.constant 0 : index
    %c0_1 = arith.constant 0 : index
    %3 = vector.load %arg3[%c0, %c0_1] : memref<16x32xf32, #tpu.memory_space<vmem>>, vector<16x32xf32>
    %4 = arith.truncf %3 : vector<16x32xf32> to vector<16x32xbf16>
    %c0_2 = arith.constant 0 : index
    %c0_3 = arith.constant 0 : index
    %5 = vector.load %arg7[%c0_2, %c0_3] : memref<16x32xf32, #tpu.memory_space<vmem>>, vector<16x32xf32>
    %c0_4 = arith.constant 0 : index
    %c0_5 = arith.constant 0 : index
    %6 = vector.load %arg4[%c0_4, %c0_5] : memref<32x32xbf16, #tpu.memory_space<vmem>>, vector<32x32xbf16>
    %cst = arith.constant dense<0.000000e+00> : vector<16x32xf32>
    %7 = tpu.matmul %4, %6, %cst {dimension_numbers = #tpu.dot_dimension_numbers<[1], [0], [0], [1], [0, 0, 1, 1], [], []>} : vector<16x32xbf16>, vector<32x32xbf16>, vector<16x32xf32> -> vector<16x32xf32>
    %8 = arith.addf %5, %7 : vector<16x32xf32>
    %c0_6 = arith.constant 0 : index
    %c0_7 = arith.constant 0 : index
    %9 = vector.load %arg7[%c0_6, %c0_7] : memref<16x32xf32, #tpu.memory_space<vmem>>, vector<16x32xf32>
    tpu.vector_store %arg7[%c0_6, %c0_7], %8 {strides = array<i32>} : memref<16x32xf32, #tpu.memory_space<vmem>>, vector<16x32xf32>,
    %c0_i32_8 = arith.constant 0 : i32
    %10 = arith.cmpi eq, %arg2, %c0_i32_8 : i32
    %11 = arith.extui %10 : i1 to i32
    %c0_i32_9 = arith.constant 0 : i32
    %12 = arith.cmpi ne, %11, %c0_i32_9 : i32
    scf.if %12 {
      %c0_10 = arith.constant 0 : index
      %c0_11 = arith.constant 0 : index
      %13 = vector.load %arg7[%c0_10, %c0_11] : memref<16x32xf32, #tpu.memory_space<vmem>>, vector<16x32xf32>
      %c0_12 = arith.constant 0 : index
      %c0_13 = arith.constant 0 : index
      %14 = vector.load %arg5[%c0_12, %c0_13] : memref<1x32xf32, #tpu.memory_space<vmem>>, vector<1x32xf32>
      %15 = vector.broadcast %14 : vector<1x32xf32> to vector<16x32xf32>
      %16 = arith.addf %13, %15 : vector<16x32xf32>
      %17 = arith.truncf %16 : vector<16x32xf32> to vector<16x32xbf16>
      %c0_14 = arith.constant 0 : index
      %c0_15 = arith.constant 0 : index
      %18 = vector.load %arg6[%c0_14, %c0_15] : memref<16x32xbf16, #tpu.memory_space<vmem>>, vector<16x32xbf16>
      tpu.vector_store %arg6[%c0_14, %c0_15], %17 {strides = array<i32>} : memref<16x32xbf16, #tpu.memory_space<vmem>>, vector<16x32xbf16>,
    } else {
    }
    return
  }
  func.func @transform_0(%arg0: i32, %arg1: i32, %arg2: i32) -> (i32, i32) {
    %c0_i32 = arith.constant 0 : i32
    return %arg0, %arg2 : i32, i32
  }
  func.func @transform_1(%arg0: i32, %arg1: i32, %arg2: i32) -> (i32, i32) {
    %c0_i32 = arith.constant 0 : i32
    return %arg2, %arg1 : i32, i32
  }
  func.func @transform_2(%arg0: i32, %arg1: i32, %arg2: i32) -> (i32, i32) {
    %c0_i32 = arith.constant 0 : i32
    %c0_i32_0 = arith.constant 0 : i32
    return %c0_i32, %arg1 : i32, i32
  }
  func.func @transform_3(%arg0: i32, %arg1: i32, %arg2: i32) -> (i32, i32) {
    %c0_i32 = arith.constant 0 : i32
    return %arg0, %arg1 : i32, i32
  }
}

</mosaic_0001>

<bundles_post_ra>
// kernel: tpu_custom_call.1
= control target key start
LH: loop header
LB: loop body
LE: loop exit
PB: predicated region body
PF: predicated region fallthrough
CT: control target
= control target key end

     0   :  { %8 = vsyncpa [#allocation4], 0  ;;  %s312_s0 = inlined_call_operand.hbm [shape: f32[16,32], index: 0, kind: input, shape index: {}]   ;;  %s313_s1 = inlined_call_operand.hbm [shape: bf16[32,32], index: 1, kind: input, shape index: {}]   ;;  %s314_s2 = inlined_call_operand.vmem [shape: f32[1,32], index: 2, kind: input, shape index: {}]   ;;  %s315_s3 = inlined_call_operand.hbm [shape: bf16[16,32], index: 3, kind: output, shape index: {}]  }
   0x1   :  { %9 = vsyncpa [#allocation7], 0 }
   0x2   :  { %10 = vsyncpa [#allocation5], 0  ;;  %s260_s12 = smov [#allocation3]  }
   0x3   :  { %s16_s13 = sshll.u32 %s260_s12, 4  ;;  %s17_s13 = int_to_ptr.vmem [resolvable:$true] %s16_s13 }
   0x4   :  { %s202_s14 = scalar_lea.vmem %s17_s13, 256  ;;  %p207_p1 = scmp.lt.s32.totalorder %s17_s13, %s17_s13 }
   0x5   :  { %p203_p0 = scmp.ne.s32.totalorder %s17_s13, %s202_s14  ;;  %p208_p2 = scmp.lt.s32.totalorder %s202_s14, %s202_s14 }
   0x7   :  { %p209_p3 = por %p208_p2, %p207_p1 }
   0x9   :  { %p210_p4 = pnand %p209_p3, %p203_p0 }
   0xb   :  { %213 = shalt.err (!%p210_p4)
}
   0xc   :  { %s261_s15 = smov 128   ;;  %s262_s16 = smov 8  }
   0xd   :  { %22 = dma.hbm_to_vmem [thread:$0]  %s312_s0, 256, %s17_s13, [#allocation4], %s261_s15, %s261_s15, %s262_s16  }
   0xe   :  { %s263_s19 = smov [#allocation6]  }
   0xf   :  { %s28_s20 = sshll.u32 %s263_s19, 4  ;;  %s29_s20 = int_to_ptr.vmem [resolvable:$true] %s28_s20 }
  0x10   :  { %s222_s21 = scalar_lea.vmem %s29_s20, 256  ;;  %p227_p6 = scmp.lt.s32.totalorder %s29_s20, %s29_s20 }
  0x11   :  { %p223_p5 = scmp.ne.s32.totalorder %s29_s20, %s222_s21  ;;  %p228_p7 = scmp.lt.s32.totalorder %s222_s21, %s222_s21 }
  0x13   :  { %p229_p8 = por %p228_p7, %p227_p6 }
  0x15   :  { %p230_p9 = pnand %p229_p8, %p223_p5 }
  0x17   :  { %233 = shalt.err (!%p230_p9)
}
  0x18   :  { %s264_s22 = smov 64   ;;  %s265_s23 = smov 4  }
  0x19   :  { %34 = dma.hbm_to_vmem [thread:$0]  %s313_s1, 256, %s29_s20, [#allocation7], %s264_s22, %s264_s22, %s265_s23  }
  0x1a   :  { %254 = dma.done.wait [#allocation4], 256  }
  0x1b   :  { %255 = vsyncadd [#allocation4], 4294967040 }
  0x1c   :  { %256 = dma.done.wait [#allocation7], 256  }
  0x1d   :  { %257 = vsyncadd [#allocation7], 4294967040  ;;  %vm48_vm0 = vcmask 261120   ;;  %v266_v0 = vmov 0.0   ;;  %vm267_vm1 = vmmov 0   ;;  %v192_v1 = vld [vmem:[#allocation6 + $0x8] sm:$0xff]  }
  0x1e   :  { %175 = vmatprep.subr.bf16.mxu0 %v266_v0  ;;  %179 = vmatprep.mubr.msk.bf16.mxu0 %vm267_vm1, %v266_v0  ;;  %49 = vst.msk [vmem:[#allocation2] sm:$0xff] %vm48_vm0, %v266_v0  ;;  %50 = vst.msk [vmem:[#allocation2 + $0x8] sm:$0xff] %vm48_vm0, %v266_v0  ;;  %v193_v2 = vld [vmem:[#allocation6] sm:$0xff]   ;;  %v51_v3 = vld [vmem:[#allocation3] sm:$0xff]  ;;  %vm143_vm2 = vcmask 257024   ;;  %s268_s26 = smov [#allocation8]  }
  0x1f   :  { %176 = vmatpush3.bf16.msra.mxu0 %v192_v1  ;;  %v52_v4 = vld [vmem:[#allocation3 + $0x8] sm:$0xff]  ;;  %v167_v14 = vld [vmem:[%s314_s2] ss:$0 sm:$0xff]  ;;  %s151_s27 = sshll.u32 %s268_s26, 4  ;;  %s152_s27 = int_to_ptr.vmem [resolvable:$true] %s151_s27 }
  0x20   :  { %177 = vmatprep.subr.bf16.mxu0 %v266_v0  ;;  %v53_v5 = vpack.c.bf16 %v52_v4, %v51_v3  ;;  %s234_s28 = scalar_lea.vmem %s152_s27, 128  ;;  %p239_p11 = scmp.lt.s32.totalorder %s152_s27, %s152_s27 }
  0x21   :  { %p235_p10 = scmp.ne.s32.totalorder %s152_s27, %s234_s28  ;;  %p240_p12 = scmp.lt.s32.totalorder %s234_s28, %s234_s28 }
  0x23   :  { %178 = vmatpush3.bf16.msra.mxu0 %v193_v2  ;;  %p241_p13 = por %p240_p12, %p239_p11 }
  0x25   :  { %v54_v6 = vld [vmem:[#allocation2] sm:$0xff]  ;;  %v55_v10 = vld [vmem:[#allocation2 + $0x8] sm:$0xff]  ;;  %p242_p0 = pnand %p241_p13, %p235_p10 }
  0x26   :  { %180 = vmatmul.mubr.msk.bf16.vlgmr.msra.gmra.mxu0 %vm48_vm0, %v53_v5 }
  0xe6   :  { %v110_v7 = vpop.f32.mrf.mxu0 }
  0xe7   :  { %v117_v8 = vadd.f32 %v110_v7, %v54_v6 }
  0xe8   :  { %v181_v9 = vpop.f32.mrf.mxu0 }
  0xe9   :  { %119 = vst.msk [vmem:[#allocation2] sm:$0xff] %vm48_vm0, %v117_v8 }
  0xea   :  { %v113_v11 = vpop.f32.mrf.mxu0 }
  0xeb   :  { %v118_v12 = vadd.f32 %v113_v11, %v55_v10 }
  0xec   :  { %v182_v13 = vpop.f32.mrf.mxu0 }
  0xed   :  { %120 = vst.msk [vmem:[#allocation2 + $0x8] sm:$0xff] %vm48_vm0, %v118_v12 }
  0xf0   :  { %v124_v15 = vld [vmem:[#allocation2] sm:$0xff] }
  0xf1   :  { %v133_v16 = vadd.f32 %v167_v14, %v124_v15 }
  0xf3   :  { %v170_v17 = vpack.c.bf16 %v133_v16, %v133_v16 }
  0xf4   :  { %v125_v18 = vld [vmem:[#allocation2 + $0x8] sm:$0xff] }
  0xf5   :  { %v134_v19 = vadd.f32 %v167_v14, %v125_v18  ;;  %144 = vst.msk [vmem:[#allocation8] sm:$0xf] %vm143_vm2, %v170_v17 }
  0xf7   :  { %v171_v20 = vpack.c.bf16 %v134_v19, %v134_v19 }
  0xf9   :  { %145 = vst.msk [vmem:[#allocation8 + $0x4] sm:$0xf] %vm143_vm2, %v171_v20 }
  0xfa   :  { %245 = shalt.err (!%p242_p0)
}
  0xfb   :  { %157 = dma.vmem_to_hbm [thread:$0]  %s152_s27, 128, %s315_s3, [#allocation5], %s264_s22, %s264_s22, %s265_s23  }
  0xfc   :  { %258 = dma.done.wait [#allocation5], 128  }
  0xfd   :  { %259 = vsyncadd [#allocation5], 4294967168 }
  0xfe   :  { %161 = vsyncpa [#allocation4], 1 }
  0xff   :  { %162 = vsyncpa [#allocation7], 1 }
 0x100   :  { %163 = vsyncpa [#allocation5], 1 }

</bundles_post_ra>
